<compile_context>
chip_gen: v6e
topology: v6e:2x2x1
jax: 0.10.0
libtpu: 0.0.40
codegen_flags: <defaults>
</compile_context>

<pallas_src>
import functools

import numpy as np
import jax
import jax.numpy as jnp
from jax.experimental import pallas as pl
from jax.experimental.pallas import tpu as pltpu


def _round_up(x, m):
    return ((x + m - 1) // m) * m


def _vmem_limit(nbytes):
    return int(min(64 * 2**20, max(8 * 2**20, 2 * nbytes)))


# -----------------------------------------------------------------------------
# Kernel 1: fused projection.
# One row-tiled MXU matmul against w_cat = [W_proj | W_skip? | Wa_src | Wa_tgt]
# produces, for every node: projected features (stored bf16), optional skip
# projection (f32), and the per-head source/target attention scores (f32).
# -----------------------------------------------------------------------------
def _fused_proj_kernel(x_ref, w_ref, *out_refs, hf, num_heads, has_skip):
    y = jnp.dot(x_ref[...], w_ref[...], preferred_element_type=jnp.float32)
    proj_ref, ssrc_ref, stgt_ref = out_refs[0], out_refs[1], out_refs[2]
    c = 2 * hf if has_skip else hf
    proj_ref[...] = y[:, :hf].astype(proj_ref.dtype)           # bf16 features
    ssrc_ref[...] = y[:, c:c + num_heads]                      # <proj_h, a_src_h>
    stgt_ref[...] = y[:, c + num_heads:c + 2 * num_heads]      # <proj_h, a_tgt_h>
    if has_skip:
        out_refs[3][...] = y[:, hf:2 * hf]                     # x @ W_skip


def _fused_projection(x, w_cat, *, hf, num_heads, has_skip, tile_rows):
    n_pad, f_in = x.shape
    total = w_cat.shape[1]

    out_shape = [
        jax.ShapeDtypeStruct((n_pad, hf), jnp.bfloat16),           # proj
        jax.ShapeDtypeStruct((n_pad, num_heads), jnp.float32),     # s_src
        jax.ShapeDtypeStruct((n_pad, num_heads), jnp.float32),     # s_tgt
    ]
    out_specs = [
        pl.BlockSpec((tile_rows, hf), lambda i: (i, 0)),
        pl.BlockSpec((tile_rows, num_heads), lambda i: (i, 0)),
        pl.BlockSpec((tile_rows, num_heads), lambda i: (i, 0)),
    ]
    if has_skip:
        out_shape.append(jax.ShapeDtypeStruct((n_pad, hf), jnp.float32))
        out_specs.append(pl.BlockSpec((tile_rows, hf), lambda i: (i, 0)))

    flops = 2 * n_pad * f_in * total
    bytes_accessed = 4 * (n_pad * f_in + f_in * total + n_pad * total)
    vmem_est = 4 * (2 * tile_rows * f_in + 2 * f_in * total
                    + 2 * tile_rows * total + tile_rows * total)

    kernel = functools.partial(_fused_proj_kernel, hf=hf, num_heads=num_heads,
                               has_skip=has_skip)
    return pl.pallas_call(
        kernel,
        out_shape=tuple(out_shape),
        grid_spec=pltpu.PrefetchScalarGridSpec(
            num_scalar_prefetch=0,
            grid=(n_pad // tile_rows,),
            in_specs=[
                pl.BlockSpec((tile_rows, f_in), lambda i: (i, 0)),  # row tile of x
                pl.BlockSpec((f_in, total), lambda i: (0, 0)),      # weights resident
            ],
            out_specs=tuple(out_specs),
        ),
        compiler_params=pltpu.CompilerParams(
            dimension_semantics=("parallel",),
            vmem_limit_bytes=_vmem_limit(vmem_est)),
        cost_estimate=pl.CostEstimate(flops=int(flops), transcendentals=0,
                                      bytes_accessed=int(bytes_accessed)),
    )(x, w_cat)


# -----------------------------------------------------------------------------
# Kernel 2: fused attention + aggregation + skip + bias + ELU.
# grid = (num_query_tiles,), parallel.  Scores are precomputed, so the kernel
# only does: broadcast-add, LeakyReLU, adjacency select, stable softmax,
# (tile_q, N) @ (N, F) aggregation per head, and one fused epilogue store.
# -----------------------------------------------------------------------------
def _gat_attention_kernel(proj_ref, stgt_ref, ssrc_ref, adj_ref, skip_ref,
                          bias_ref, out_ref, acc_ref, *, num_heads, f_out,
                          identity_skip):
    adj = adj_ref[...] != 0                       # (tile_q, N) int8 -> bool
    ssrc = ssrc_ref[...]                          # (tile_q, H) f32
    neg = jnp.float32(-1e9)

    for h in range(num_heads):                    # static unroll; H is small
        lo = h * f_out
        hi = lo + f_out

        # scores s[q, j] = LeakyReLU(s_src[q] + s_tgt[j]); off-edge -> -1e9
        s = ssrc[:, h:h + 1] + stgt_ref[h:h + 1, :]          # (tile_q, N)
        s = jnp.where(s >= 0.0, s, 0.2 * s)                  # LeakyReLU(0.2)
        s = jnp.where(adj, s, neg)                           # connectivity mask

        # numerically stable row-wise softmax; divide on the EUP (free slot)
        m = jnp.max(s, axis=-1, keepdims=True)
        p = jnp.exp(s - m)
        attn = p * pl.reciprocal(jnp.sum(p, axis=-1, keepdims=True), approx=True)

        # aggregate neighbours on the MXU: bf16 operands, f32 accumulation
        ph = proj_ref[:, lo:hi]                               # (N, F) bf16, ref slice
        head = jnp.dot(attn.astype(ph.dtype), ph,
                       preferred_element_type=jnp.float32)    # (tile_q, F)

        if identity_skip:
            head = head + skip_ref[...]                       # x tile (f_in == F)
        else:
            head = head + skip_ref[:, lo:hi]                  # projected skip slice
        acc_ref[:, lo:hi] = head      # per-head scratch write ends live range

    # single fused, lane-dense epilogue: + bias, ELU
    y = acc_ref[...] + bias_ref[...]
    out_ref[...] = jnp.where(y > 0.0, y, jnp.exp(jnp.minimum(y, 0.0)) - 1.0)


# -----------------------------------------------------------------------------
# Wrapper: full GATLayerImp2 forward (concat=True, ELU, skip connection, bias)
# -----------------------------------------------------------------------------
def gat_layer_imp2_forward(x, connectivity_mask, w_proj, w_skip, a_src, a_tgt,
                           bias, num_heads, f_out):
    """Returns (out_nodes_features (N, H*F), connectivity_mask)."""
    n, f_in = x.shape
    hf = num_heads * f_out
    x = x.astype(jnp.float32)

    # TODO(synk): nn.Dropout(p=0.6) is a training-time stochastic op; this is
    # the inference forward (dropout == identity).  Only the concat=True path
    # (the module default) is implemented.

    identity_skip = (f_out == f_in)

    # ---- fused weight matrix: [W_proj | W_skip? | W_proj_h@a_src | W_proj_h@a_tgt]
    w3 = w_proj.reshape(f_in, num_heads, f_out).astype(jnp.float32)
    w_ssrc = jnp.einsum("ihf,hf->ih", w3, a_src.astype(jnp.float32))
    w_stgt = jnp.einsum("ihf,hf->ih", w3, a_tgt.astype(jnp.float32))
    blocks = [w_proj.astype(jnp.float32)]
    if not identity_skip:
        blocks.append(w_skip.astype(jnp.float32))
    blocks += [w_ssrc, w_stgt]
    w_cat = jnp.concatenate(blocks, axis=1)

    # ---- pad N to a multiple of 128 (lane/sublane friendly tiles, grid >= 2)
    n_pad = max(128, _round_up(n, 128))
    x_pad = jnp.pad(x, ((0, n_pad - n), (0, 0)))

    # int8 adjacency instead of streaming the dense f32 (N,N) mask.
    # Entries > -1e8 are treated as edges (additive mask value 0), matching the
    # 0 / -inf connectivity masks this layer is used with; the -1e9 is applied
    # as an f32 select inside the kernel.  Pad rows/cols are masked off.
    adj = connectivity_mask.astype(jnp.float32) > -1e8
    adj = jnp.pad(adj, ((0, n_pad - n), (0, n_pad - n))).astype(jnp.int8)

    tile_rows = 128 if n_pad >= 256 else 64        # keep grid length >= 2

    proj_outs = _fused_projection(x_pad, w_cat, hf=hf, num_heads=num_heads,
                                  has_skip=not identity_skip,
                                  tile_rows=tile_rows)
    if identity_skip:
        proj_bf16, s_src, s_tgt = proj_outs
        skip = x_pad                 # broadcast-added per head inside the kernel
    else:
        proj_bf16, s_src, s_tgt, skip = proj_outs
    s_tgt_t = s_tgt.T                # (H, N_pad), tiny transpose in XLA

    bias2 = bias.reshape(1, hf).astype(jnp.float32)

    tile_q = tile_rows
    grid = (n_pad // tile_q,)
    skip_w = skip.shape[1]

    flops = 2 * n_pad * n_pad * hf + 8 * n_pad * n_pad * num_heads
    transcendentals = n_pad * n_pad * num_heads
    bytes_accessed = (n_pad * n_pad                       # int8 adjacency
                      + 2 * n_pad * hf                    # bf16 proj
                      + 4 * n_pad * (skip_w + hf)         # skip + out
                      + 4 * n_pad * 2 * num_heads + 4 * hf)
    # NOTE: constant-index inputs (proj / s_tgt / bias) are still double
    # buffered by the default pipeliner; budget both buffers explicitly.
    vmem_est = (2 * n_pad * hf * 2                        # resident bf16 proj
                + 2 * num_heads * n_pad * 4               # s_tgt^T
                + 2 * tile_q * num_heads * 4              # s_src tile
                + 2 * tile_q * n_pad * 1                  # int8 adjacency tile
                + 2 * tile_q * skip_w * 4                 # skip tile
                + 2 * tile_q * hf * 4                     # out tile
                + 2 * hf * 4                              # bias
                + tile_q * hf * 4)                        # scratch accumulator

    kernel = functools.partial(_gat_attention_kernel, num_heads=num_heads,
                               f_out=f_out, identity_skip=identity_skip)
    out_pad = pl.pallas_call(
        kernel,
        out_shape=jax.ShapeDtypeStruct((n_pad, hf), jnp.float32),
        grid_spec=pltpu.PrefetchScalarGridSpec(
            num_scalar_prefetch=0,
            grid=grid,
            in_specs=[
                pl.BlockSpec((n_pad, hf), lambda i: (0, 0)),            # proj, resident
                pl.BlockSpec((num_heads, n_pad), lambda i: (0, 0)),     # s_tgt^T
                pl.BlockSpec((tile_q, num_heads), lambda i: (i, 0)),    # s_src tile
                pl.BlockSpec((tile_q, n_pad), lambda i: (i, 0)),        # adjacency tile
                pl.BlockSpec((tile_q, skip_w), lambda i: (i, 0)),       # skip tile
                pl.BlockSpec((1, hf), lambda i: (0, 0)),                # bias
            ],
            out_specs=pl.BlockSpec((tile_q, hf), lambda i: (i, 0)),
            scratch_shapes=[pltpu.VMEM((tile_q, hf), jnp.float32)],
        ),
        compiler_params=pltpu.CompilerParams(
            dimension_semantics=("parallel",),
            vmem_limit_bytes=_vmem_limit(vmem_est)),
        cost_estimate=pl.CostEstimate(flops=int(flops),
                                      transcendentals=int(transcendentals),
                                      bytes_accessed=int(bytes_accessed)),
    )(proj_bf16, s_tgt_t, s_src, adj, skip, bias2)

    return out_pad[:n], connectivity_mask


# -----------------------------------------------------------------------------
# Plain-JAX reference (mirrors the PyTorch math, dropout = identity)
# -----------------------------------------------------------------------------
def gat_reference(x, connectivity_mask, w_proj, w_skip, a_src, a_tgt, bias,
                  num_heads, f_out):
    n, f_in = x.shape
    proj = (x @ w_proj).reshape(n, num_heads, f_out)
    s_src = jnp.sum(proj * a_src[None], axis=-1, keepdims=True)    # (N, H, 1)
    s_tgt = jnp.sum(proj * a_tgt[None], axis=-1, keepdims=True)    # (N, H, 1)
    s_src = jnp.transpose(s_src, (1, 0, 2))                        # (H, N, 1)
    s_tgt = jnp.transpose(s_tgt, (1, 2, 0))                        # (H, 1, N)
    scores = jax.nn.leaky_relu(s_src + s_tgt, negative_slope=0.2)
    attn = jax.nn.softmax(scores + connectivity_mask[None], axis=-1)
    out = jnp.einsum("hij,hjf->hif", attn, jnp.transpose(proj, (1, 0, 2)))
    out = jnp.transpose(out, (1, 0, 2))                            # (N, H, F)
    if f_out == f_in:
        out = out + x[:, None, :]
    else:
        out = out + (x @ w_skip).reshape(n, num_heads, f_out)
    out = out.reshape(n, num_heads * f_out) + bias
    return jax.nn.elu(out)


if __name__ == "__main__":
    key = jax.random.PRNGKey(0)
    N, F_IN, NUM_HEADS, F_OUT = 16, 32, 4, 8        # concat output width = 32

    ks = jax.random.split(key, 6)
    x = jax.random.normal(ks[0], (N, F_IN), dtype=jnp.float32)

    # connectivity mask: 0 for edges (self-loops included), large negative otherwise
    adj = jax.random.bernoulli(ks[1], p=0.4, shape=(N, N)) | jnp.eye(N, dtype=bool)
    conn_mask = jnp.where(adj, 0.0, -1e9).astype(jnp.float32)

    w_proj = jax.random.normal(ks[2], (F_IN, NUM_HEADS * F_OUT),
                               dtype=jnp.float32) / float(np.sqrt(F_IN))
    w_skip = jax.random.normal(ks[3], (F_IN, NUM_HEADS * F_OUT),
                               dtype=jnp.float32) / float(np.sqrt(F_IN))
    a_src = jax.random.normal(ks[4], (NUM_HEADS, F_OUT),
                              dtype=jnp.float32) / float(np.sqrt(F_OUT))
    a_tgt = jax.random.normal(ks[5], (NUM_HEADS, F_OUT),
                              dtype=jnp.float32) / float(np.sqrt(F_OUT))
    bias = jnp.zeros((NUM_HEADS * F_OUT,), dtype=jnp.float32)  # zero-init, as in module

    out, mask_out = gat_layer_imp2_forward(
        x, conn_mask, w_proj, w_skip, a_src, a_tgt, bias, NUM_HEADS, F_OUT)
    out = jax.block_until_ready(out)

    ref = gat_reference(x, conn_mask, w_proj, w_skip, a_src, a_tgt, bias,
                        NUM_HEADS, F_OUT)
    np.testing.assert_allclose(np.asarray(out), np.asarray(ref),
                               rtol=2e-2, atol=2e-2)
    assert out.shape == (N, NUM_HEADS * F_OUT)
    assert np.array_equal(np.asarray(mask_out), np.asarray(conn_mask))
    print("KERNEL_OK")
</pallas_src>

<mosaic_0001>
module attributes {stable_mosaic.version = 11 : i64} {
  func.func @_fused_proj_kernel(%arg0: i32, %arg1: memref<64x32xf32, #tpu.memory_space<vmem>>, %arg2: memref<32x72xf32, #tpu.memory_space<vmem>>, %arg3: memref<64x32xbf16, #tpu.memory_space<vmem>>, %arg4: memref<64x4xf32, #tpu.memory_space<vmem>>, %arg5: memref<64x4xf32, #tpu.memory_space<vmem>>, %arg6: memref<64x32xf32, #tpu.memory_space<vmem>>) attributes {dimension_semantics = [#tpu.dimension_semantics<parallel>], iteration_bounds = array<i64: 2>, scalar_prefetch = 0 : i64, scratch_operands = 0 : i64, tpu.core_type = #tpu.core_type<tc>, window_params = [{transform_indices = @transform_0, window_bounds = array<i64: 64, 32>}, {pipeline_mode = #tpu.pipeline_mode<synchronous>, transform_indices = @transform_1, window_bounds = array<i64: 32, 72>}, {transform_indices = @transform_2, window_bounds = array<i64: 64, 32>}, {transform_indices = @transform_3, window_bounds = array<i64: 64, 4>}, {transform_indices = @transform_4, window_bounds = array<i64: 64, 4>}, {transform_indices = @transform_5, window_bounds = array<i64: 64, 32>}]} {
    %c0 = arith.constant 0 : index
    %c0_0 = arith.constant 0 : index
    %0 = vector.load %arg1[%c0, %c0_0] : memref<64x32xf32, #tpu.memory_space<vmem>>, vector<64x32xf32>
    %c0_1 = arith.constant 0 : index
    %c0_2 = arith.constant 0 : index
    %1 = vector.load %arg2[%c0_1, %c0_2] : memref<32x72xf32, #tpu.memory_space<vmem>>, vector<32x72xf32>
    %cst = arith.constant dense<0.000000e+00> : vector<64x72xf32>
    %2 = tpu.matmul %0, %1, %cst {dimension_numbers = #tpu.dot_dimension_numbers<[1], [0], [0], [1], [0, 0, 1, 1], [], []>} : vector<64x32xf32>, vector<32x72xf32>, vector<64x72xf32> -> vector<64x72xf32>
    %3 = vector.extract_strided_slice %2 {offsets = [0, 0], sizes = [64, 32], strides = [1, 1]} : vector<64x72xf32> to vector<64x32xf32>
    %4 = arith.truncf %3 : vector<64x32xf32> to vector<64x32xbf16>
    %c0_3 = arith.constant 0 : index
    %c0_4 = arith.constant 0 : index
    %5 = vector.load %arg3[%c0_3, %c0_4] : memref<64x32xbf16, #tpu.memory_space<vmem>>, vector<64x32xbf16>
    tpu.vector_store %arg3[%c0_3, %c0_4], %4 {strides = array<i32>} : memref<64x32xbf16, #tpu.memory_space<vmem>>, vector<64x32xbf16>,
    %6 = vector.extract_strided_slice %2 {offsets = [0, 64], sizes = [64, 4], strides = [1, 1]} : vector<64x72xf32> to vector<64x4xf32>
    %c0_5 = arith.constant 0 : index
    %c0_6 = arith.constant 0 : index
    %7 = vector.load %arg4[%c0_5, %c0_6] : memref<64x4xf32, #tpu.memory_space<vmem>>, vector<64x4xf32>
    tpu.vector_store %arg4[%c0_5, %c0_6], %6 {strides = array<i32>} : memref<64x4xf32, #tpu.memory_space<vmem>>, vector<64x4xf32>,
    %8 = vector.extract_strided_slice %2 {offsets = [0, 68], sizes = [64, 4], strides = [1, 1]} : vector<64x72xf32> to vector<64x4xf32>
    %c0_7 = arith.constant 0 : index
    %c0_8 = arith.constant 0 : index
    %9 = vector.load %arg5[%c0_7, %c0_8] : memref<64x4xf32, #tpu.memory_space<vmem>>, vector<64x4xf32>
    tpu.vector_store %arg5[%c0_7, %c0_8], %8 {strides = array<i32>} : memref<64x4xf32, #tpu.memory_space<vmem>>, vector<64x4xf32>,
    %10 = vector.extract_strided_slice %2 {offsets = [0, 32], sizes = [64, 32], strides = [1, 1]} : vector<64x72xf32> to vector<64x32xf32>
    %c0_9 = arith.constant 0 : index
    %c0_10 = arith.constant 0 : index
    %11 = vector.load %arg6[%c0_9, %c0_10] : memref<64x32xf32, #tpu.memory_space<vmem>>, vector<64x32xf32>
    tpu.vector_store %arg6[%c0_9, %c0_10], %10 {strides = array<i32>} : memref<64x32xf32, #tpu.memory_space<vmem>>, vector<64x32xf32>,
    return
  }
  func.func @transform_0(%arg0: i32) -> (i32, i32) {
    %c0_i32 = arith.constant 0 : i32
    %c0_i32_0 = arith.constant 0 : i32
    return %arg0, %c0_i32 : i32, i32
  }
  func.func @transform_1(%arg0: i32) -> (i32, i32) {
    %c0_i32 = arith.constant 0 : i32
    %c0_i32_0 = arith.constant 0 : i32
    %c0_i32_1 = arith.constant 0 : i32
    return %c0_i32, %c0_i32_0 : i32, i32
  }
  func.func @transform_2(%arg0: i32) -> (i32, i32) {
    %c0_i32 = arith.constant 0 : i32
    %c0_i32_0 = arith.constant 0 : i32
    return %arg0, %c0_i32 : i32, i32
  }
  func.func @transform_3(%arg0: i32) -> (i32, i32) {
    %c0_i32 = arith.constant 0 : i32
    %c0_i32_0 = arith.constant 0 : i32
    return %arg0, %c0_i32 : i32, i32
  }
  func.func @transform_4(%arg0: i32) -> (i32, i32) {
    %c0_i32 = arith.constant 0 : i32
    %c0_i32_0 = arith.constant 0 : i32
    return %arg0, %c0_i32 : i32, i32
  }
  func.func @transform_5(%arg0: i32) -> (i32, i32) {
    %c0_i32 = arith.constant 0 : i32
    %c0_i32_0 = arith.constant 0 : i32
    return %arg0, %c0_i32 : i32, i32
  }
}

</mosaic_0001>

<bundles_post_ra>
// kernel: tpu_custom_call.1
= control target key start
LH: loop header
LB: loop body
LE: loop exit
PB: predicated region body
PF: predicated region fallthrough
CT: control target
= control target key end

     0   :  { %s847_s18 = smov 0   ;;  %s983_s0 = inlined_call_operand.vmem [shape: f32[128,32], index: 0, kind: input, shape index: {}]   ;;  %s984_s1 = inlined_call_operand.vmem [shape: f32[32,72], index: 1, kind: input, shape index: {}]   ;;  %s985_s2 = inlined_call_operand.vmem [shape: bf16[128,32], index: 2, kind: output, shape index: {0}]   ;;  %s986_s3 = inlined_call_operand.vmem [shape: f32[128,4], index: 3, kind: output, shape index: {1}]   ;;  %s987_s4 = inlined_call_operand.vmem [shape: f32[128,4], index: 4, kind: output, shape index: {2}]   ;;  %s988_s5 = inlined_call_operand.vmem [shape: f32[128,32], index: 5, kind: output, shape index: {3}]  }
   0x1 LB: > { %s714_s19 = sadd.s32 4294967295, %s812_s18   ;;  %p718_p0 = scmp.ge.s32.totalorder %s812_s18, 1  ;;  %s812_s18 = sphi %s847_s18, %s16_s18  }
   0x2   : > { %p195_p1 = scmp.lt.s32.totalorder %s812_s18, 3 }
   0x4   : > { %p196_p2 = pnand %p718_p0, %p195_p1 }
   0x5   : > { %s719_s24 = sshll.u32 (!%p196_p2), %s714_s19, 3  ;;  %s814_s12 = smov (!%p196_p2), 64  }
   0x6   : > { %199 = sbr.rel (%p196_p2) target bundleno = 374 (0x176), region = 28  ;;  %p239_p3 = scmp.lt.s32.totalorder (!%p196_p2), %s719_s24, 15 }
   0x7   : > { %s815_s13 = smov (!%p196_p2), 60   ;;  %s816_s14 = smov (!%p196_p2), 96  }
   0xb   : > { %v279_v0 = vld [vmem:[%s984_s1 + $0x18] sm:$0xff]  ;;  %v278_v1 = vld [vmem:[%s984_s1 + $0x10] sm:$0xff]  ;;  %v277_v2 = vld [vmem:[%s984_s1 + $0x8] sm:$0xff]  ;;  %s990_s24 = smov (!%p239_p3, %s719_s24), 15  ;;  %vm280_vm0 = vcmask 261120   ;;  %vm442_vm1 = vcmask 257024  }
   0xc   : > { %767 = vmatprep.subr.mxu0 %v279_v0  ;;  %787 = vmatprep.subr.mxu1 %v279_v0  ;;  %v276_v3 = vld [vmem:[%s984_s1] sm:$0xff]  ;;  %s870_s29 = sshll.u32 %s990_s24, 3  ;;  %s722_s8 = sshll.u32 %s990_s24, 2  ;;  %vm483_vm2 = vcmask 31744  }
   0xd   : > { %768 = vmatpush3.msra.mxu0 %v279_v0  ;;  %791 = vmatpush3.msra.mxu1 %v279_v0  ;;  %s242_s7 = scalar_lea.vmem %s983_s0, %s870_s29  ;;  %s888_s11 = scalar_lea.vmem %s985_s2, %s722_s8 }
   0xe   : > { %769 = vmatprep.subr.mxu0 %v278_v1  ;;  %788 = vmatprep.subr.mxu1 %v278_v1  ;;  %v268_v4 = vld [vmem:[%s242_s7] sm:$0xff]  ;;  %v269_v6 = vld [vmem:[%s242_s7 + $0x8] sm:$0xff]  ;;  %v270_v8 = vld [vmem:[%s242_s7 + $0x10] sm:$0xff]  ;;  %s918_s17 = scalar_lea.vmem %s986_s3, %s870_s29  ;;  %s928_s21 = scalar_lea.vmem %s987_s4, %s870_s29 }
   0xf   : > { %770 = vmatpush3.msra.mxu0 %v278_v1  ;;  %792 = vmatpush3.msra.mxu1 %v278_v1  ;;  %v272_v5 = vld [vmem:[%s242_s7 + $0x20] sm:$0xff]  ;;  %v273_v7 = vld [vmem:[%s242_s7 + $0x28] sm:$0xff]  ;;  %v274_v9 = vld [vmem:[%s242_s7 + $0x30] sm:$0xff]  ;;  %s942_s24 = scalar_lea.vmem %s988_s5, %s870_s29 }
  0x10   : > { %771 = vmatprep.subr.mxu0 %v277_v2  ;;  %789 = vmatprep.subr.mxu1 %v277_v2  ;;  %v271_v10 = vld [vmem:[%s242_s7 + $0x18] sm:$0xff] }
  0x11   : > { %772 = vmatpush3.msra.mxu0 %v277_v2  ;;  %793 = vmatpush3.msra.mxu1 %v277_v2  ;;  %v275_v11 = vld [vmem:[%s242_s7 + $0x38] sm:$0xff] }
  0x12   : > { %773 = vmatprep.subr.mxu0 %v276_v3  ;;  %790 = vmatprep.subr.mxu1 %v276_v3 }
  0x13   : > { %774 = vmatpush3.msra.mxu0 %v276_v3  ;;  %794 = vmatpush3.msra.mxu1 %v276_v3 }
  0x14   : > { %775 = vmatprep.mubr.msk.f32.mxu0 %vm280_vm0, %v268_v4  ;;  %781 = vmatprep.mubr.msk.f32.mxu1 %vm280_vm0, %v272_v5 }
  0x15   : > { %776 = vmatmul.mubr.msk.f32.vlgmr.msra.gmra.mxu0 %vm280_vm0, %v269_v6  ;;  %782 = vmatmul.mubr.msk.f32.vlgmr.msra.gmra.mxu1 %vm280_vm0, %v273_v7 }
  0x16   : > { %778 = vmatprep.mubr.msk.f32.mxu0 %vm280_vm0, %v270_v8  ;;  %784 = vmatprep.mubr.msk.f32.mxu1 %vm280_vm0, %v274_v9 }
  0x19   : > { %779 = vmatmul.mubr.msk.f32.gmra.mxu0 %vm280_vm0, %v271_v10  ;;  %785 = vmatmul.mubr.msk.f32.gmra.mxu1 %vm280_vm0, %v275_v11 }
  0xd5   : > { %v777_v12 = vpop.f32.mrf.mxu0  ;;  %v783_v13 = vpop.f32.mrf.mxu1 }
  0xd6   : > { %v748_v14 = vpack.c.bf16 %v777_v12, %v777_v12  ;;  %v752_v15 = vpack.c.bf16 %v783_v13, %v783_v13  ;;  %469 = vrot.lane.b32.xlu1 %v783_v13, %s814_s12  ;;  %461 = vrot.lane.b32.xlu0 %v777_v12, %s814_s12 }
  0xd7   : > { %v371_v16 = vpop.f32.mrf.mxu0  ;;  %v391_v17 = vpop.f32.mrf.mxu1 }
  0xd8   : > { %444 = vst.msk [vmem:[%s888_s11 + $0x4] sm:$0xf] %vm442_vm1, %v748_v14  ;;  %448 = vst.msk [vmem:[%s888_s11 + $0x14] sm:$0xf] %vm442_vm1, %v752_v15  ;;  %v747_v18 = vpack.c.bf16 %v371_v16, %v371_v16  ;;  %v751_v19 = vpack.c.bf16 %v391_v17, %v391_v17 }
  0xd9   : > { %v780_v20 = vpop.f32.mrf.mxu0  ;;  %v786_v21 = vpop.f32.mrf.mxu1 }
  0xda   : > { %443 = vst.msk [vmem:[%s888_s11] sm:$0xf] %vm442_vm1, %v747_v18  ;;  %447 = vst.msk [vmem:[%s888_s11 + $0x10] sm:$0xf] %vm442_vm1, %v751_v19  ;;  %494 = vrot.lane.b32.xlu1 %v777_v12, %s815_s13  ;;  %459 = vrot.lane.b32.xlu0 %v371_v16, %s814_s12  ;;  %v750_v22 = vpack.c.bf16 %v780_v20, %v780_v20  ;;  %v754_v23 = vpack.c.bf16 %v786_v21, %v786_v21 }
  0xdb   : > { %v381_v24 = vpop.f32.mrf.mxu0  ;;  %v401_v25 = vpop.f32.mrf.mxu1 }
  0xdc   : > { %446 = vst.msk [vmem:[%s888_s11 + $0xc] sm:$0xf] %vm442_vm1, %v750_v22  ;;  %v749_v26 = vpack.c.bf16 %v381_v24, %v381_v24  ;;  %450 = vst.msk [vmem:[%s888_s11 + $0x1c] sm:$0xf] %vm442_vm1, %v754_v23  ;;  %v753_v27 = vpack.c.bf16 %v401_v25, %v401_v25 }
  0xde   : > { %502 = vrot.lane.b32.xlu1 %v783_v13, %s815_s13  ;;  %467 = vrot.lane.b32.xlu0 %v391_v17, %s814_s12  ;;  %445 = vst.msk [vmem:[%s888_s11 + $0x8] sm:$0xf] %vm442_vm1, %v749_v26  ;;  %449 = vst.msk [vmem:[%s888_s11 + $0x18] sm:$0xf] %vm442_vm1, %v753_v27 }
  0xe2   : > { %526 = vrot.lane.b32.xlu1 %v777_v12, %s816_s14  ;;  %492 = vrot.lane.b32.xlu0 %v371_v16, %s815_s13 }
  0xe6   : > { %534 = vrot.lane.b32.xlu1 %v783_v13, %s816_s14  ;;  %500 = vrot.lane.b32.xlu0 %v391_v17, %s815_s13 }
  0xea   : > { %524 = vrot.lane.b32.xlu0 %v371_v16, %s816_s14  ;;  %465 = vrot.lane.b32.xlu1 %v780_v20, %s814_s12 }
  0xee   : > { %532 = vrot.lane.b32.xlu0 %v391_v17, %s816_s14  ;;  %473 = vrot.lane.b32.xlu1 %v786_v21, %s814_s12 }
  0xf2   : > { %471 = vrot.lane.b32.xlu0 %v401_v25, %s814_s12  ;;  %498 = vrot.lane.b32.xlu1 %v780_v20, %s815_s13 }
  0xf6   : > { %506 = vrot.lane.b32.xlu1 %v786_v21, %s815_s13  ;;  %496 = vrot.lane.b32.xlu0 %v381_v24, %s815_s13 }
  0xfa   : > { %530 = vrot.lane.b32.xlu1 %v780_v20, %s816_s14  ;;  %504 = vrot.lane.b32.xlu0 %v401_v25, %s815_s13 }
  0xfe   : > { %528 = vrot.lane.b32.xlu0 %v381_v24, %s816_s14  ;;  %463 = vrot.lane.b32.xlu1 %v381_v24, %s814_s12 }
 0x102   : > { %536 = vrot.lane.b32.xlu0 %v401_v25, %s816_s14  ;;  %538 = vrot.lane.b32.xlu1 %v786_v21, %s816_s14 }
 0x148   : > { %v470_v28 = vpop.permute.xlu1 %469  ;;  %v462_v29 = vpop.permute.xlu0 %461 }
 0x149   : > { %489 = vst.msk [vmem:[%s918_s17 + $0x28] sm:$0xff] %vm483_vm2, %v470_v28  ;;  %485 = vst.msk [vmem:[%s918_s17 + $0x8] sm:$0xff] %vm483_vm2, %v462_v29 }
 0x14c   : > { %v495_v30 = vpop.permute.xlu1 %494  ;;  %v460_v31 = vpop.permute.xlu0 %459 }
 0x14d   : > { %517 = vst.msk [vmem:[%s928_s21 + $0x8] sm:$0xff] %vm483_vm2, %v495_v30  ;;  %484 = vst.msk [vmem:[%s918_s17] sm:$0xff] %vm483_vm2, %v460_v31 }
 0x150   : > { %v503_v32 = vpop.permute.xlu1 %502  ;;  %v468_v33 = vpop.permute.xlu0 %467 }
 0x151   : > { %521 = vst.msk [vmem:[%s928_s21 + $0x28] sm:$0xff] %vm483_vm2, %v503_v32  ;;  %488 = vst.msk [vmem:[%s918_s17 + $0x20] sm:$0xff] %vm483_vm2, %v468_v33 }
 0x154   : > { %v527_v34 = vpop.permute.xlu1 %526  ;;  %v493_v35 = vpop.permute.xlu0 %492 }
 0x155   : > { %549 = vst.msk [vmem:[%s942_s24 + $0x8] sm:$0xff] %vm280_vm0, %v527_v34 }
 0x156   : > { %516 = vst.msk [vmem:[%s928_s21] sm:$0xff] %vm483_vm2, %v493_v35 }
 0x158   : > { %v535_v36 = vpop.permute.xlu1 %534  ;;  %v501_v37 = vpop.permute.xlu0 %500 }
 0x159   : > { %553 = vst.msk [vmem:[%s942_s24 + $0x28] sm:$0xff] %vm280_vm0, %v535_v36 }
 0x15a   : > { %520 = vst.msk [vmem:[%s928_s21 + $0x20] sm:$0xff] %vm483_vm2, %v501_v37 }
 0x15c   : > { %v525_v38 = vpop.permute.xlu0 %524  ;;  %v466_v39 = vpop.permute.xlu1 %465 }
 0x15d   : > { %548 = vst.msk [vmem:[%s942_s24] sm:$0xff] %vm280_vm0, %v525_v38 }
 0x15e   : > { %487 = vst.msk [vmem:[%s918_s17 + $0x18] sm:$0xff] %vm483_vm2, %v466_v39 }
 0x160   : > { %v533_v40 = vpop.permute.xlu0 %532  ;;  %v474_v41 = vpop.permute.xlu1 %473 }
 0x161   : > { %552 = vst.msk [vmem:[%s942_s24 + $0x20] sm:$0xff] %vm280_vm0, %v533_v40 }
 0x162   : > { %491 = vst.msk [vmem:[%s918_s17 + $0x38] sm:$0xff] %vm483_vm2, %v474_v41 }
 0x164   : > { %v472_v42 = vpop.permute.xlu0 %471  ;;  %v499_v43 = vpop.permute.xlu1 %498 }
 0x165   : > { %490 = vst.msk [vmem:[%s918_s17 + $0x30] sm:$0xff] %vm483_vm2, %v472_v42  ;;  %519 = vst.msk [vmem:[%s928_s21 + $0x18] sm:$0xff] %vm483_vm2, %v499_v43 }
 0x168   : > { %v507_v44 = vpop.permute.xlu1 %506  ;;  %v497_v45 = vpop.permute.xlu0 %496 }
 0x169   : > { %523 = vst.msk [vmem:[%s928_s21 + $0x38] sm:$0xff] %vm483_vm2, %v507_v44  ;;  %518 = vst.msk [vmem:[%s928_s21 + $0x10] sm:$0xff] %vm483_vm2, %v497_v45 }
 0x16c   : > { %v531_v46 = vpop.permute.xlu1 %530  ;;  %v505_v47 = vpop.permute.xlu0 %504 }
 0x16d   : > { %551 = vst.msk [vmem:[%s942_s24 + $0x18] sm:$0xff] %vm280_vm0, %v531_v46 }
 0x16e   : > { %522 = vst.msk [vmem:[%s928_s21 + $0x30] sm:$0xff] %vm483_vm2, %v505_v47 }
 0x170   : > { %v529_v48 = vpop.permute.xlu0 %528  ;;  %v464_v49 = vpop.permute.xlu1 %463 }
 0x171   : > { %550 = vst.msk [vmem:[%s942_s24 + $0x10] sm:$0xff] %vm280_vm0, %v529_v48 }
 0x172   : > { %486 = vst.msk [vmem:[%s918_s17 + $0x10] sm:$0xff] %vm483_vm2, %v464_v49 }
 0x174   : > { %v537_v50 = vpop.permute.xlu0 %536  ;;  %v539_v51 = vpop.permute.xlu1 %538 }
 0x175   : > { %554 = vst.msk [vmem:[%s942_s24 + $0x30] sm:$0xff] %vm280_vm0, %v537_v50  ;;  %555 = vst.msk [vmem:[%s942_s24 + $0x38] sm:$0xff] %vm280_vm0, %v539_v51 }
 0x176 PF: > { %s16_s18 = sadd.s32 1, %s812_s18  }
 0x177   : > { %p13_p4 = scmp.ge.s32.totalorder %s16_s18, 4  }
 0x179   :  { %15 = sbr.rel (!%p13_p4) target bundleno = 1 (0x1), region = 94 }

</bundles_post_ra>
